<compile_context>
chip_gen: v5e
topology: v5e:2x2
jax: 0.10.0
libtpu: 0.0.40
codegen_flags: <defaults>
</compile_context>

<pallas_src>
import functools

import jax
import jax.numpy as jnp
from jax.experimental import pallas as pl
from jax.experimental.pallas import tpu as pltpu


def _make_kernel(method: str, reverse_order: bool, skip_expand: bool,
                 Cx: int, Cg: int):
    def kernel(x_ref, g_ref, o_ref):
        odt = o_ref.dtype
        # x_ref: (1, Cx, T) if not skip_expand else (1, 1, Cx, T)
        # g_ref: (1, 1, Cg, T); o_ref: (1, 1, Cout, T)
        x = (x_ref[0, 0] if skip_expand else x_ref[0]).astype(odt)   # (Cx, T)
        g = g_ref[0, 0].astype(odt)                                  # (Cg, T)
        if method == 'cat':
            if reverse_order:
                o_ref[0, 0, :Cg, :] = g
                o_ref[0, 0, Cg:, :] = x
            else:
                o_ref[0, 0, :Cx, :] = x
                o_ref[0, 0, Cx:, :] = g
        elif method == 'add':
            o_ref[0, 0] = x + g
        elif method == 'mulcat':
            o_ref[0, 0, :Cg, :] = x * g
            o_ref[0, 0, Cg:, :] = g
        elif method == 'muladd':
            o_ref[0, 0] = x * g + g
        else:
            raise NotImplementedError(method)
    return kernel


def _choose_hw_tiling(HW: int, Cx: int, Cg: int, Cout: int, itemsize: int):
    """Lane-dense HW tile (multiple of 128) + padded HW extent.

    The tile is capped so the double-buffered per-step footprint stays well
    under the smallest scoped-VMEM budget across v5e/v6e/v7x.
    """
    budget = 24 * 1024 * 1024                       # conservative, v7x/v5e-safe
    bytes_per_lane = 2 * (Cx + Cg + Cout) * itemsize  # 2x = double buffering
    cap = max(128, min(2048, (budget // max(bytes_per_lane, 1)) // 128 * 128))
    hw128 = ((HW + 127) // 128) * 128
    if hw128 <= cap:
        return hw128, hw128                          # single lane-dense tile
    # pick the largest tile <= cap (multiple of 128) that minimizes padding
    best_tile, best_pad = cap, (-HW) % cap
    for t in range(cap, 0, -128):
        pad = (-HW) % t
        if pad < best_pad:
            best_tile, best_pad = t, pad
        if pad == 0:
            break
    return best_tile, HW + best_pad


@functools.partial(jax.jit, static_argnames=('method', 'reverse_order', 'skip_expand'))
def main_to_group_distributor(x, g, *, method='cat', reverse_order=False,
                              skip_expand=False):
    """Pallas implementation of MainToGroupDistributor.forward (transforms=None)."""
    B, N, Cg, H, W = g.shape
    HW = H * W
    out_dtype = jnp.result_type(x.dtype, g.dtype)

    if skip_expand:
        assert x.shape[:2] == (B, N)
        Cx = x.shape[2]
    else:
        assert x.shape[0] == B
        Cx = x.shape[1]

    if method == 'cat':
        Cout = Cx + Cg
    elif method == 'mulcat':
        assert Cx == Cg
        Cout = 2 * Cg
    elif method in ('add', 'muladd'):
        assert Cx == Cg
        Cout = Cg
    else:
        raise NotImplementedError(method)

    itemsize = jnp.dtype(out_dtype).itemsize
    tile_hw, HW_pad = _choose_hw_tiling(HW, Cx, Cg, Cout, itemsize)
    n_hw = HW_pad // tile_hw

    g2 = g.reshape(B, N, Cg, HW)
    if skip_expand:
        x2 = x.reshape(B, N, Cx, HW)
    else:
        x2 = x.reshape(B, Cx, HW)
    if HW_pad != HW:
        pad = HW_pad - HW
        g2 = jnp.pad(g2, ((0, 0), (0, 0), (0, 0), (0, pad)))
        x2 = jnp.pad(x2, [(0, 0)] * (x2.ndim - 1) + [(0, pad)])

    # Grid is (B, hw_tiles, N): N innermost so the broadcast x block index
    # (b, 0, hw) repeats across objects and Pallas skips its re-DMA.
    if skip_expand:
        x_spec = pl.BlockSpec((1, 1, Cx, tile_hw), lambda b, hw, n: (b, n, 0, hw))
    else:
        x_spec = pl.BlockSpec((1, Cx, tile_hw), lambda b, hw, n: (b, 0, hw))
    g_spec = pl.BlockSpec((1, 1, Cg, tile_hw), lambda b, hw, n: (b, n, 0, hw))
    o_spec = pl.BlockSpec((1, 1, Cout, tile_hw), lambda b, hw, n: (b, n, 0, hw))

    out = pl.pallas_call(
        _make_kernel(method, reverse_order, skip_expand, Cx, Cg),
        out_shape=jax.ShapeDtypeStruct((B, N, Cout, HW_pad), out_dtype),
        grid_spec=pltpu.PrefetchScalarGridSpec(
            num_scalar_prefetch=0,
            grid=(B, n_hw, N),
            in_specs=[x_spec, g_spec],
            out_specs=o_spec,
        ),
        compiler_params=pltpu.CompilerParams(
            dimension_semantics=("parallel", "parallel", "arbitrary"),
            vmem_limit_bytes=48 * 1024 * 1024),
    )(x2, g2)

    if HW_pad != HW:
        out = out[..., :HW]
    return out.reshape(B, N, Cout, H, W)


def _reference(x, g, *, method='cat', reverse_order=False, skip_expand=False):
    N = g.shape[1]
    if not skip_expand:
        x = jnp.broadcast_to(x[:, None], (x.shape[0], N) + x.shape[1:])
    if method == 'cat':
        return jnp.concatenate([g, x] if reverse_order else [x, g], axis=2)
    if method == 'add':
        return x + g
    if method == 'mulcat':
        return jnp.concatenate([x * g, g], axis=2)
    if method == 'muladd':
        return x * g + g
    raise NotImplementedError(method)


if __name__ == "__main__":
    key = jax.random.PRNGKey(0)
    kx, kg = jax.random.split(key)
    B, N, C, H, W = 2, 3, 4, 16, 16
    x = jax.random.normal(kx, (B, C, H, W), dtype=jnp.float32)
    g = jax.random.normal(kg, (B, N, C, H, W), dtype=jnp.float32)

    ok = True
    for method in ('cat', 'add', 'mulcat', 'muladd'):
        for rev in (False, True):
            out = main_to_group_distributor(x, g, method=method, reverse_order=rev)
            jax.block_until_ready(out)
            ref = _reference(x, g, method=method, reverse_order=rev)
            if out.shape != ref.shape or not jnp.allclose(out, ref, atol=1e-6):
                ok = False

    # skip_expand path: x already carries the object axis
    x5 = jax.random.normal(kx, (B, N, C, H, W), dtype=jnp.float32)
    out = main_to_group_distributor(x5, g, method='cat', skip_expand=True)
    jax.block_until_ready(out)
    ref = _reference(x5, g, method='cat', skip_expand=True)
    if out.shape != ref.shape or not jnp.allclose(out, ref, atol=1e-6):
        ok = False

    # non-128-multiple spatial extent exercises the HW padding/tiling path
    Hs, Ws = 12, 13
    xs = jax.random.normal(kx, (B, C, Hs, Ws), dtype=jnp.float32)
    gs = jax.random.normal(kg, (B, N, C, Hs, Ws), dtype=jnp.float32)
    out = main_to_group_distributor(xs, gs, method='mulcat')
    jax.block_until_ready(out)
    ref = _reference(xs, gs, method='mulcat')
    if out.shape != ref.shape or not jnp.allclose(out, ref, atol=1e-6):
        ok = False

    if ok:
        print("KERNEL_OK")
    else:
        print("KERNEL_MISMATCH")
</pallas_src>

<mosaic_0001>
module attributes {stable_mosaic.version = 11 : i64} {
  func.func @kernel(%arg0: i32, %arg1: i32, %arg2: i32, %arg3: memref<1x4x256xf32, #tpu.memory_space<vmem>>, %arg4: memref<1x1x4x256xf32, #tpu.memory_space<vmem>>, %arg5: memref<1x1x8x256xf32, #tpu.memory_space<vmem>>) attributes {dimension_semantics = [#tpu.dimension_semantics<parallel>, #tpu.dimension_semantics<parallel>, #tpu.dimension_semantics<arbitrary>], iteration_bounds = array<i64: 2, 1, 3>, scalar_prefetch = 0 : i64, scratch_operands = 0 : i64, tpu.core_type = #tpu.core_type<tc>, window_params = [{transform_indices = @transform_0, window_bounds = array<i64: 1, 4, 256>}, {transform_indices = @transform_1, window_bounds = array<i64: 1, 1, 4, 256>}, {transform_indices = @transform_2, window_bounds = array<i64: 1, 1, 8, 256>}]} {
    %c0 = arith.constant 0 : index
    %c0_0 = arith.constant 0 : index
    %c0_1 = arith.constant 0 : index
    %0 = vector.load %arg3[%c0, %c0_0, %c0_1] : memref<1x4x256xf32, #tpu.memory_space<vmem>>, vector<1x4x256xf32>
    %1 = vector.shape_cast %0 : vector<1x4x256xf32> to vector<4x256xf32>
    %c0_2 = arith.constant 0 : index
    %c0_3 = arith.constant 0 : index
    %c0_4 = arith.constant 0 : index
    %c0_5 = arith.constant 0 : index
    %2 = vector.load %arg4[%c0_2, %c0_3, %c0_4, %c0_5] : memref<1x1x4x256xf32, #tpu.memory_space<vmem>>, vector<1x1x4x256xf32>
    %3 = vector.shape_cast %2 : vector<1x1x4x256xf32> to vector<4x256xf32>
    %c0_6 = arith.constant 0 : index
    %c0_7 = arith.constant 0 : index
    %c0_8 = arith.constant 0 : index
    %c0_9 = arith.constant 0 : index
    %4 = vector.load %arg5[%c0_6, %c0_7, %c0_8, %c0_9] : memref<1x1x8x256xf32, #tpu.memory_space<vmem>>, vector<1x1x4x256xf32>
    %5 = vector.shape_cast %4 : vector<1x1x4x256xf32> to vector<4x256xf32>
    %6 = vector.shape_cast %1 : vector<4x256xf32> to vector<1x1x4x256xf32>
    tpu.vector_store %arg5[%c0_6, %c0_7, %c0_8, %c0_9], %6 {strides = array<i32>} : memref<1x1x8x256xf32, #tpu.memory_space<vmem>>, vector<1x1x4x256xf32>,
    %c0_10 = arith.constant 0 : index
    %c0_11 = arith.constant 0 : index
    %c4 = arith.constant 4 : index
    %c0_12 = arith.constant 0 : index
    %7 = vector.load %arg5[%c0_10, %c0_11, %c4, %c0_12] : memref<1x1x8x256xf32, #tpu.memory_space<vmem>>, vector<1x1x4x256xf32>
    %8 = vector.shape_cast %7 : vector<1x1x4x256xf32> to vector<4x256xf32>
    %9 = vector.shape_cast %3 : vector<4x256xf32> to vector<1x1x4x256xf32>
    tpu.vector_store %arg5[%c0_10, %c0_11, %c4, %c0_12], %9 {strides = array<i32>} : memref<1x1x8x256xf32, #tpu.memory_space<vmem>>, vector<1x1x4x256xf32>,
    return
  }
  func.func @transform_0(%arg0: i32, %arg1: i32, %arg2: i32) -> (i32, i32, i32) {
    %c0_i32 = arith.constant 0 : i32
    %c0_i32_0 = arith.constant 0 : i32
    return %arg0, %c0_i32, %arg1 : i32, i32, i32
  }
  func.func @transform_1(%arg0: i32, %arg1: i32, %arg2: i32) -> (i32, i32, i32, i32) {
    %c0_i32 = arith.constant 0 : i32
    %c0_i32_0 = arith.constant 0 : i32
    return %arg0, %arg2, %c0_i32, %arg1 : i32, i32, i32, i32
  }
  func.func @transform_2(%arg0: i32, %arg1: i32, %arg2: i32) -> (i32, i32, i32, i32) {
    %c0_i32 = arith.constant 0 : i32
    %c0_i32_0 = arith.constant 0 : i32
    return %arg0, %arg2, %c0_i32, %arg1 : i32, i32, i32, i32
  }
}

</mosaic_0001>

<bundles_post_ra>
// kernel: main_to_group_distributor.1
= control target key start
LH: loop header
LB: loop body
LE: loop exit
PB: predicated region body
PF: predicated region fallthrough
CT: control target
= control target key end

     0   :  { %s512_s9 = smov 0   ;;  %s514_s10 = smov 0   ;;  %s566_s0 = inlined_call_operand.vmem [shape: f32[2,4,256], index: 0, kind: input, shape index: {}]   ;;  %s567_s1 = inlined_call_operand.vmem [shape: f32[2,3,4,256], index: 1, kind: input, shape index: {}]   ;;  %s568_s2 = inlined_call_operand.vmem [shape: f32[2,3,8,256], index: 2, kind: output, shape index: {}]  }
   0x1   :  { %s516_s11 = smov 0   ;;  %s518_s12 = smov 0  }
   0x2   :  { %s520_s13 = smov 0  }
   0x3 LB: > { %s24_s14 = sadd.s32 1, %s487_s11  ;;  %s31_s15 = sadd.s32 1, %s491_s12  ;;  %s495_s13 = sphi %s520_s13, %s12_s13   ;;  %s491_s12 = sphi %s518_s12, %s572_s12   ;;  %s487_s11 = sphi %s516_s11, %s571_s11   ;;  %s483_s10 = sphi %s514_s10, %s570_s10   ;;  %s479_s9 = sphi %s512_s9, %s569_s9  }
   0x4   : > { %p25_p0 = scmp.ge.s32.totalorder %s24_s14, 3  ;;  %p406_p1 = scmp.ge.s32.totalorder %s495_s13, 1 }
   0x5   : > { %p165_p2 = scmp.lt.s32.totalorder %s495_s13, 7 }
   0x6   : > { %s574_s14 = smov (%p25_p0, %s24_s14), 0  ;;  %s576_s15 = smov (!%p25_p0, %s31_s15), %s491_s12 }
   0x7   : > { %p166_p3 = pnand %p406_p1, %p165_p2  ;;  %p33_p4 = scmp.ge.s32.totalorder %s576_s15, 2 }
   0x8   : > { %p213_p5 = scmp.lt.s32.totalorder (!%p166_p3), %s483_s10, 1  ;;  %p225_p6 = scmp.lt.s32.totalorder (!%p166_p3), %s479_s9, 2 }
   0x9   : > { %s578_s15 = smov (%p33_p4, %s576_s15), 0  ;;  %169 = sbr.rel (%p166_p3) target bundleno = 38 (0x26), region = 28 }
   0xe   : > { %s580_s10 = smov (!%p213_p5, %s483_s10), 1  ;;  %s582_s9 = smov (!%p225_p6, %s479_s9), 2 }
   0xf   : > { %s415_s16 = sshll.u32 %s580_s10, 3  ;;  %s416_s17 = smul.u32 6, %s580_s10 }
  0x10   : > { %s220_s20 = scalar_lea.vmem %s566_s0, %s415_s16  ;;  %s409_s21 = sshll.u32 %s582_s9, 1 }
  0x11   : > { %v250_v0 = vld [vmem:[%s220_s20] sm:$0xff]  ;;  %s232_s22 = sadd.s32 %s416_s17, %s409_s21 }
  0x12   : > { %253 = vst [vmem:[#allocation1] ss:$2 sm:$0xff] %v250_v0  ;;  %s410_s23 = sshll.u32 %s232_s22, 2  ;;  %s412_s24 = sshll.u32 %s232_s22, 3 }
  0x13   : > { %s234_s27 = scalar_lea.vmem %s567_s1, %s410_s23  ;;  %s248_s30 = scalar_lea.vmem %s568_s2, %s412_s24 }
  0x14   : > { %v251_v1 = vld [vmem:[%s234_s27] sm:$0xff] }
  0x19   : > { %v254_v2 = vld.sshfl [vmem:[#allocation1] sm:$0xff pattern:$0x75316420]  ;;  %v255_v3 = vld.sshfl [vmem:[#allocation1 + $0x8] sm:$0xff pattern:$0x75316420] }
  0x1a   : > { %258 = vst [vmem:[%s248_s30] sm:$0xf] %v254_v2 }
  0x1b   : > { %259 = vst [vmem:[%s248_s30 + $0x8] sm:$0xf] %v255_v3 }
  0x1c   : > { %262 = vst [vmem:[#allocation1 + $0x1] ss:$2 sm:$0xff] %v251_v1 }
  0x23   : > { %v263_v4 = vld.sshfl [vmem:[#allocation1] sm:$0xff pattern:$0x75316420]  ;;  %v264_v5 = vld.sshfl [vmem:[#allocation1 + $0x8] sm:$0xff pattern:$0x75316420] }
  0x24   : > { %267 = vst [vmem:[%s248_s30] sm:$0xf0] %v263_v4 }
  0x25   : > { %268 = vst [vmem:[%s248_s30 + $0x8] sm:$0xf0] %v264_v5 }
  0x26 PF: > { %s12_s13 = sadd.s32 1, %s495_s13   ;;  %s569_s9 = smov %s487_s11 }
  0x27   : > { %p9_p7 = scmp.ge.s32.totalorder %s12_s13, 8   ;;  %s570_s10 = smov %s491_s12 }
  0x28   : > { %s571_s11 = smov %s574_s14  ;;  %s572_s12 = smov %s578_s15 }
  0x29   :  { %11 = sbr.rel (!%p9_p7) target bundleno = 3 (0x3), region = 62 }

</bundles_post_ra>
